<compile_context>
chip_gen: v7x
topology: tpu7x:2x2x1
jax: 0.10.0
libtpu: 0.0.40
codegen_flags: <defaults>
</compile_context>

<pallas_src>
import functools
import math

import jax
import jax.numpy as jnp
from jax import lax
from jax.experimental import pallas as pl
from jax.experimental.pallas import tpu as pltpu


# --------------------------------------------------------------------------- helpers

def _layer_norm(x, gamma, beta, eps=1e-5):
    mu = jnp.mean(x, axis=-1, keepdims=True)
    xc = x - mu
    var = jnp.mean(xc * xc, axis=-1, keepdims=True)
    return xc * lax.rsqrt(var + eps) * gamma + beta


def _wspec(shape):
    # whole weight array resident in VMEM, same block for every grid point
    return pl.BlockSpec(shape, lambda *_: (0,) * len(shape))


def _bf(x):
    return x.astype(jnp.bfloat16)


def _row_tile(rows, max_rows=2048):
    """Largest row tile that divides `rows`, is <= max_rows and sublane friendly."""
    if rows <= max_rows:
        return rows
    for t in range(max_rows, 0, -1):
        if rows % t == 0 and (t % 8 == 0 or t == rows):
            return t
    return rows


def _edge_tile_from(n, max_rows=2048):
    """Number of 'from' nodes per edge tile (tile = t_from * n edge rows)."""
    if n % 8 != 0 or n * n <= max_rows:
        return n
    for t in range(n, 0, -1):
        if n % t == 0 and t * n <= max_rows:
            return t
    return 1


# --------------------------------------------------------------------------- kernels

def node_embed_kernel(n, xc_ref, xd_ref, w1_ref, b1_ref, w2_ref, b2_ref,
                      w3_ref, b3_ref, wna_ref, wnb_ref, out_ref):
    # xc: (R,2)  xd: (R,1)  out: (R,H) -- R flat rows over (batch*node)
    R = xc_ref.shape[0]
    Hh = w2_ref.shape[1]
    xc = xc_ref[...]
    xd = xd_ref[...]
    w1 = w1_ref[...]                                            # (2,H)
    w2 = w2_ref[...]                                            # (2,H/2)
    # depot branch: relu(W1(coords));  customer branch: relu([W2(coords)|W3(demand)])
    dep = jnp.maximum(xc[:, 0:1] * w1[0:1, :] + xc[:, 1:2] * w1[1:2, :]
                      + b1_ref[...], 0.0)                       # (R,H)
    cl = jnp.maximum(xc[:, 0:1] * w2[0:1, :] + xc[:, 1:2] * w2[1:2, :]
                     + b2_ref[...], 0.0)                        # (R,H/2)
    cr = jnp.maximum(xd * w3_ref[...] + b3_ref[...], 0.0)       # (R,H/2)
    row = pl.program_id(0) * R + lax.broadcasted_iota(jnp.int32, (R, 1), 0)
    is_depot = (row % n) == 0
    feat_l = jnp.where(is_depot, dep[:, :Hh], cl)
    feat_r = jnp.where(is_depot, dep[:, Hh:], cr)
    # node_embedding (bias-free) split into halves: no lane concat, MXU accumulates.
    out = (jnp.dot(feat_l.astype(jnp.bfloat16), wna_ref[...],
                   preferred_element_type=jnp.float32)
           + jnp.dot(feat_r.astype(jnp.bfloat16), wnb_ref[...],
                     preferred_element_type=jnp.float32))
    out_ref[...] = out.astype(out_ref.dtype)


def edge_embed_kernel(m_ref, a_ref, w4_ref, b4_ref, w5_ref, b5_ref,
                      wea_ref, web_ref, out_ref):
    # m,a: (R,1) flat rows over (batch*node*node)   out: (R,H)
    y1 = jnp.maximum(m_ref[...] * w4_ref[...] + b4_ref[...], 0.0)   # (R,H/2)
    y2 = jnp.maximum(a_ref[...] * w5_ref[...] + b5_ref[...], 0.0)   # (R,H/2)
    out = (jnp.dot(y1.astype(jnp.bfloat16), wea_ref[...],
                   preferred_element_type=jnp.float32)
           + jnp.dot(y2.astype(jnp.bfloat16), web_ref[...],
                     preferred_element_type=jnp.float32))
    out_ref[...] = out.astype(out_ref.dtype)


def gcn_layer_kernel(n, t_from,
                     h_ref, adj_ref, e_ref,
                     w_hall_ref, b_hall_ref,
                     b_nfold_ref, w_vnb_ref,
                     g1n_ref, be1n_ref, g2n_ref, be2n_ref,
                     w_e1vf_ref, b_e1vf_ref, w_veb_ref,
                     g1e_ref, be1e_ref, g2e_ref, be2e_ref,
                     hout_ref, eout_ref, p2_scr, p3_scr):
    H = h_ref.shape[-1]
    j = pl.program_id(1)

    # ------------- node branch + per-node edge terms: once per batch (j == 0) -------------
    @pl.when(j == 0)
    def _node_branch():
        h_bf = h_ref[...]                                       # (N,H) bf16
        h = h_bf.astype(jnp.float32)
        # single fused (H,6H) projection of h:
        # [Wq | Wk | Wv@W_node | V_node_in@V_node_a | W2e@W_edge | W3e@W_edge]
        proj = (jnp.dot(h_bf, w_hall_ref[...], preferred_element_type=jnp.float32)
                + b_hall_ref[...])                              # (N,6H)
        q = proj[:, 0:H]
        kk = proj[:, H:2 * H]
        vv = proj[:, 2 * H:3 * H]                               # values in W_node space
        vfold = proj[:, 3 * H:4 * H]                            # V_node_in -> V_node fold
        p2_scr[...] = proj[:, 4 * H:5 * H]                      # (W2e@We)(x)  "from" term
        p3_scr[...] = proj[:, 5 * H:6 * H]                      # (W3e@We)(x)  "to" term

        # kNN attention == masked softmax over all N nodes (mask = kNN adjacency)
        s = lax.dot_general(q, kk, (((1,), (1,)), ((), ())),
                            preferred_element_type=jnp.float32)
        s = s * (1.0 / math.sqrt(float(H)))
        s = jnp.where(adj_ref[...] > 0.5, s, -1e30)
        mx = jnp.max(s, axis=-1, keepdims=True)
        p = jnp.exp(s - mx)
        denom = jnp.sum(p, axis=-1, keepdims=True)
        attn = jnp.dot(p, vv, preferred_element_type=jnp.float32) / denom   # exact softmax

        # h_nb = ln1(x + relu(W_node(attn(x, nb))))   (W_node folded into V projection)
        t = jnp.maximum(attn + b_nfold_ref[...], 0.0)
        h_nb = _layer_norm(h + t, g1n_ref[...], be1n_ref[...])
        # h_new = ln2(h_nb + relu(V_node(cat(V_node_in(x), h_nb))))
        t2 = jnp.maximum(vfold + jnp.dot(h_nb.astype(jnp.bfloat16), w_vnb_ref[...],
                                         preferred_element_type=jnp.float32), 0.0)
        hout_ref[...] = _layer_norm(h_nb + t2, g2n_ref[...],
                                    be2n_ref[...]).astype(hout_ref.dtype)

    # ------------- edge branch: one tile of t_from*N edge rows per grid step -------------
    e_bf = e_ref[...]                                           # (T,H) bf16
    e = e_bf.astype(jnp.float32)
    # fused: W1e@We on e + folded V_edge_in -> V_edge(first half) chain
    e1vf = (jnp.dot(e_bf, w_e1vf_ref[...], preferred_element_type=jnp.float32)
            + b_e1vf_ref[...])                                  # (T,2H)
    t1 = e1vf[:, :H]
    evfold = e1vf[:, H:]

    # broadcast the per-node from/to terms to the T = t_from*N edge rows of this tile
    start = pl.multiple_of(j * t_from, t_from)
    p2t = p2_scr[pl.ds(start, t_from), :]                       # (t_from,H)
    p3a = p3_scr[...]                                           # (N,H)
    rep = (jnp.broadcast_to(p2t[:, None, :], (t_from, n, H)).reshape(t_from * n, H)
           + jnp.broadcast_to(p3a[None, :, :], (t_from, n, H)).reshape(t_from * n, H))

    # h_nb = ln1(e + relu(W_edge(W1e(e) + W2e(x_from) + W3e(x_to))))
    u = jnp.maximum(t1 + rep, 0.0)
    h_nb_e = _layer_norm(e + u, g1e_ref[...], be1e_ref[...])
    # e_new = ln2(h_nb + relu(V_edge(cat(V_edge_in(e), h_nb))))
    t2e = jnp.maximum(evfold + jnp.dot(h_nb_e.astype(jnp.bfloat16), w_veb_ref[...],
                                       preferred_element_type=jnp.float32), 0.0)
    eout_ref[...] = _layer_norm(h_nb_e + t2e, g2e_ref[...],
                                be2e_ref[...]).astype(eout_ref.dtype)


# --------------------------------------------------------------------------- wrappers

def node_embed(xc_flat, xd_flat, n, p):
    rows = xc_flat.shape[0]
    H = p["w1"].shape[1]
    Hh = H // 2
    tile = _row_tile(rows)
    return pl.pallas_call(
        functools.partial(node_embed_kernel, n),
        out_shape=jax.ShapeDtypeStruct((rows, H), jnp.bfloat16),
        grid=(rows // tile,),
        in_specs=[
            pl.BlockSpec((tile, 2), lambda i: (i, 0)),
            pl.BlockSpec((tile, 1), lambda i: (i, 0)),
            _wspec((2, H)), _wspec((1, H)),
            _wspec((2, Hh)), _wspec((1, Hh)),
            _wspec((1, Hh)), _wspec((1, Hh)),
            _wspec((Hh, H)), _wspec((Hh, H)),
        ],
        out_specs=pl.BlockSpec((tile, H), lambda i: (i, 0)),
        compiler_params=pltpu.CompilerParams(dimension_semantics=("parallel",)),
    )(xc_flat, xd_flat, p["w1"], p["b1"], p["w2"], p["b2"], p["w3"], p["b3"],
      p["w_ne_a"], p["w_ne_b"])


def edge_embed(m_flat, a_flat, p):
    rows = m_flat.shape[0]
    H = p["w_ne_a"].shape[1]
    Hh = H // 2
    tile = _row_tile(rows)
    return pl.pallas_call(
        edge_embed_kernel,
        out_shape=jax.ShapeDtypeStruct((rows, H), jnp.bfloat16),
        grid=(rows // tile,),
        in_specs=[
            pl.BlockSpec((tile, 1), lambda i: (i, 0)),
            pl.BlockSpec((tile, 1), lambda i: (i, 0)),
            _wspec((1, Hh)), _wspec((1, Hh)), _wspec((1, Hh)), _wspec((1, Hh)),
            _wspec((Hh, H)), _wspec((Hh, H)),
        ],
        out_specs=pl.BlockSpec((tile, H), lambda i: (i, 0)),
        compiler_params=pltpu.CompilerParams(dimension_semantics=("parallel",)),
    )(m_flat, a_flat, p["w4"], p["b4"], p["w5"], p["b5"], p["w_ee_a"], p["w_ee_b"])


def gcn_layer(h, adj, e, lp):
    B, N, H = h.shape
    NN = e.shape[1]
    t_from = _edge_tile_from(N)
    n_et = N // t_from
    T = t_from * N
    return pl.pallas_call(
        functools.partial(gcn_layer_kernel, N, t_from),
        out_shape=(jax.ShapeDtypeStruct((B, N, H), jnp.bfloat16),
                   jax.ShapeDtypeStruct((B, NN, H), jnp.bfloat16)),
        grid=(B, n_et),
        in_specs=[
            pl.BlockSpec((None, N, H), lambda b, j: (b, 0, 0)),      # h (layer input x)
            pl.BlockSpec((None, N, N), lambda b, j: (b, 0, 0)),      # kNN adjacency
            pl.BlockSpec((None, T, H), lambda b, j: (b, j, 0)),      # edge row tile
            _wspec((H, 6 * H)), _wspec((1, 6 * H)),                  # fused h projection
            _wspec((1, H)), _wspec((H, H)),                          # b_nfold, V_node 2nd half
            _wspec((1, H)), _wspec((1, H)), _wspec((1, H)), _wspec((1, H)),   # ln node
            _wspec((H, 2 * H)), _wspec((1, 2 * H)),                  # W1e@We | V_edge fold
            _wspec((H, H)),                                          # V_edge 2nd half
            _wspec((1, H)), _wspec((1, H)), _wspec((1, H)), _wspec((1, H)),   # ln edge
        ],
        out_specs=(pl.BlockSpec((None, N, H), lambda b, j: (b, 0, 0)),
                   pl.BlockSpec((None, T, H), lambda b, j: (b, j, 0))),
        scratch_shapes=[pltpu.VMEM((N, H), jnp.float32),
                        pltpu.VMEM((N, H), jnp.float32)],
        compiler_params=pltpu.CompilerParams(
            dimension_semantics=("parallel", "arbitrary")),
    )(h, adj, e,
      lp["w_hall"], lp["b_hall"], lp["b_nfold"], lp["w_vnb"],
      lp["ln1n_g"], lp["ln1n_b"], lp["ln2n_g"], lp["ln2n_b"],
      lp["w_e1vf"], lp["b_e1vf"], lp["w_veb"],
      lp["ln1e_g"], lp["ln1e_b"], lp["ln2e_g"], lp["ln2e_b"])


# --------------------------------------------------------------------------- forward

def gcn_forward(params, x_c, x_d, m):
    """x_c: (B,N,2) coords, x_d: (B,N) demands, m: (B,N,N) distance matrix."""
    B, N, _ = x_c.shape
    H = params["H"]
    k = params["k"]

    # glue: kNN adjacency (argsort + one-hot scatter); also the attention mask.
    order = jnp.argsort(m, axis=-1)                     # ascending, index 0 == self
    nbr = order[:, :, 1:k + 1]                          # (B,N,k)
    adj = jax.nn.one_hot(nbr, N, dtype=jnp.float32).sum(axis=2)
    eye = jnp.eye(N, dtype=jnp.float32)
    adj = adj * (1.0 - eye) - eye                       # 1 at kNN, -1 on diagonal

    # input embeddings (batch folded into the matmul M dimension)
    h_node = node_embed(x_c.reshape(B * N, 2), x_d.reshape(B * N, 1), N, params)
    h_node = h_node.reshape(B, N, H)                                   # bf16
    h_edge = edge_embed(m.reshape(B * N * N, 1), adj.reshape(B * N * N, 1), params)
    h_edge = h_edge.reshape(B, N * N, H)                               # bf16

    # GCN layers: one fused pallas_call per layer
    for lp in params["layers"]:
        h_node, h_edge = gcn_layer(h_node, adj, h_edge, lp)

    return (h_node.astype(jnp.float32),
            h_edge.reshape(B, N, N, H).astype(jnp.float32))


# --------------------------------------------------------------------------- params

def init_params(key, H, He, num_layers, k):
    assert H == He, "GCNLayer uses a single hidden_dim for both nodes and edges"
    Hh = H // 2
    keys = iter(jax.random.split(key, 256))

    def lin(fan_in, fan_out, bias=True):
        bound = 1.0 / math.sqrt(fan_in)
        w = jax.random.uniform(next(keys), (fan_in, fan_out), jnp.float32, -bound, bound)
        if bias:
            b = jax.random.uniform(next(keys), (1, fan_out), jnp.float32, -bound, bound)
            return w, b
        return w

    p = {"H": H, "k": k}
    p["w1"], p["b1"] = lin(2, H)
    p["w2"], p["b2"] = lin(2, Hh)
    p["w3"], p["b3"] = lin(1, Hh)
    p["w4"], p["b4"] = lin(1, Hh)
    p["w5"], p["b5"] = lin(1, Hh)
    w_ne = lin(H, H, bias=False)
    w_ee = lin(He, He, bias=False)
    p["w_ne_a"], p["w_ne_b"] = _bf(w_ne[:Hh]), _bf(w_ne[Hh:])
    p["w_ee_a"], p["w_ee_b"] = _bf(w_ee[:Hh]), _bf(w_ee[Hh:])

    layers = []
    for _ in range(num_layers):
        lp = {}
        # ---- node branch ----
        wq, bq = lin(H, H)
        wk, bk = lin(H, H)
        wv, bv = lin(H, H)
        w_node, b_node = lin(H, H)
        wvi, bvi = lin(H, H)                    # V_node_in
        wvn, bvn = lin(2 * H, H)                # V_node  rows: [V_node_in(x) | h_nb]
        wvn_a, wvn_b = wvn[:H], wvn[H:]
        # ---- edge branch ----
        w1e, b1e = lin(H, H)
        w2e, b2e = lin(H, H)
        w3e, b3e = lin(H, H)
        w_edge, b_edge = lin(H, H)
        wvei, bvei = lin(H, H)                  # V_edge_in
        wve, bve = lin(2 * H, H)                # V_edge  rows: [V_edge_in(e) | h_nb]
        wve_a, wve_b = wve[:H], wve[H:]
        zeros = jnp.zeros((1, H), jnp.float32)

        # fused h-side projection  [Wq | Wk | Wv@W_node | V_in@V_a | W2e@We | W3e@We]
        lp["w_hall"] = _bf(jnp.concatenate(
            [wq, wk, wv @ w_node, wvi @ wvn_a, w2e @ w_edge, w3e @ w_edge], axis=1))
        lp["b_hall"] = jnp.concatenate(
            [bq, bk, zeros, bvi @ wvn_a + bvn, zeros, zeros], axis=1)
        lp["b_nfold"] = bv @ w_node + b_node
        lp["w_vnb"] = _bf(wvn_b)
        lp["ln1n_g"], lp["ln1n_b"] = jnp.ones((1, H)), jnp.zeros((1, H))
        lp["ln2n_g"], lp["ln2n_b"] = jnp.ones((1, H)), jnp.zeros((1, H))

        # edge-side fused e projection  [W1e@We | V_edge_in@V_edge_a]
        lp["w_e1vf"] = _bf(jnp.concatenate([w1e @ w_edge, wvei @ wve_a], axis=1))
        lp["b_e1vf"] = jnp.concatenate(
            [(b1e + b2e + b3e) @ w_edge + b_edge, bvei @ wve_a + bve], axis=1)
        lp["w_veb"] = _bf(wve_b)
        lp["ln1e_g"], lp["ln1e_b"] = jnp.ones((1, H)), jnp.zeros((1, H))
        lp["ln2e_g"], lp["ln2e_b"] = jnp.ones((1, H)), jnp.zeros((1, H))
        layers.append(lp)
    p["layers"] = layers
    return p


# --------------------------------------------------------------------------- main

if __name__ == "__main__":
    B, N, H, He, L, K = 2, 8, 32, 32, 2, 4
    key = jax.random.PRNGKey(0)
    kp, kc, kd = jax.random.split(key, 3)

    params = init_params(kp, H, He, L, K)
    x_c = jax.random.uniform(kc, (B, N, 2), jnp.float32)            # coordinates
    x_d = jax.random.uniform(kd, (B, N), jnp.float32)               # demands
    # pairwise Euclidean distance matrix (zero diagonal, as in VRP)
    m = jnp.sqrt(jnp.sum((x_c[:, :, None, :] - x_c[:, None, :, :]) ** 2, axis=-1))

    h_node, h_edge = gcn_forward(params, x_c, x_d, m)
    jax.block_until_ready((h_node, h_edge))

    assert h_node.shape == (B, N, H)
    assert h_edge.shape == (B, N, N, He)
    assert bool(jnp.all(jnp.isfinite(h_node))) and bool(jnp.all(jnp.isfinite(h_edge)))
    print("KERNEL_OK")
</pallas_src>

<mosaic_0001>
module attributes {stable_mosaic.version = 11 : i64} {
  func.func @node_embed_kernel(%arg0: i32, %arg1: memref<16x2xf32, #tpu.memory_space<vmem>>, %arg2: memref<16x1xf32, #tpu.memory_space<vmem>>, %arg3: memref<2x32xf32, #tpu.memory_space<vmem>>, %arg4: memref<1x32xf32, #tpu.memory_space<vmem>>, %arg5: memref<2x16xf32, #tpu.memory_space<vmem>>, %arg6: memref<1x16xf32, #tpu.memory_space<vmem>>, %arg7: memref<1x16xf32, #tpu.memory_space<vmem>>, %arg8: memref<1x16xf32, #tpu.memory_space<vmem>>, %arg9: memref<16x32xbf16, #tpu.memory_space<vmem>>, %arg10: memref<16x32xbf16, #tpu.memory_space<vmem>>, %arg11: memref<16x32xbf16, #tpu.memory_space<vmem>>) attributes {dimension_semantics = [#tpu.dimension_semantics<parallel>], iteration_bounds = array<i64: 1>, scalar_prefetch = 0 : i64, scratch_operands = 0 : i64, tpu.core_type = #tpu.core_type<tc>, window_params = [{transform_indices = @transform_0, window_bounds = array<i64: 16, 2>}, {transform_indices = @transform_1, window_bounds = array<i64: 16, 1>}, {pipeline_mode = #tpu.pipeline_mode<synchronous>, transform_indices = @transform_2, window_bounds = array<i64: 2, 32>}, {pipeline_mode = #tpu.pipeline_mode<synchronous>, transform_indices = @transform_3, window_bounds = array<i64: 1, 32>}, {pipeline_mode = #tpu.pipeline_mode<synchronous>, transform_indices = @transform_4, window_bounds = array<i64: 2, 16>}, {pipeline_mode = #tpu.pipeline_mode<synchronous>, transform_indices = @transform_5, window_bounds = array<i64: 1, 16>}, {pipeline_mode = #tpu.pipeline_mode<synchronous>, transform_indices = @transform_6, window_bounds = array<i64: 1, 16>}, {pipeline_mode = #tpu.pipeline_mode<synchronous>, transform_indices = @transform_7, window_bounds = array<i64: 1, 16>}, {pipeline_mode = #tpu.pipeline_mode<synchronous>, transform_indices = @transform_8, window_bounds = array<i64: 16, 32>}, {pipeline_mode = #tpu.pipeline_mode<synchronous>, transform_indices = @transform_9, window_bounds = array<i64: 16, 32>}, {transform_indices = @transform_10, window_bounds = array<i64: 16, 32>}]} {
    %c0 = arith.constant 0 : index
    %c0_0 = arith.constant 0 : index
    %0 = vector.load %arg1[%c0, %c0_0] : memref<16x2xf32, #tpu.memory_space<vmem>>, vector<16x2xf32>
    %c0_1 = arith.constant 0 : index
    %c0_2 = arith.constant 0 : index
    %1 = vector.load %arg2[%c0_1, %c0_2] : memref<16x1xf32, #tpu.memory_space<vmem>>, vector<16x1xf32>
    %c0_3 = arith.constant 0 : index
    %c0_4 = arith.constant 0 : index
    %2 = vector.load %arg3[%c0_3, %c0_4] : memref<2x32xf32, #tpu.memory_space<vmem>>, vector<2x32xf32>
    %c0_5 = arith.constant 0 : index
    %c0_6 = arith.constant 0 : index
    %3 = vector.load %arg5[%c0_5, %c0_6] : memref<2x16xf32, #tpu.memory_space<vmem>>, vector<2x16xf32>
    %4 = vector.extract_strided_slice %0 {offsets = [0, 0], sizes = [16, 1], strides = [1, 1]} : vector<16x2xf32> to vector<16x1xf32>
    %5 = vector.extract_strided_slice %2 {offsets = [0, 0], sizes = [1, 32], strides = [1, 1]} : vector<2x32xf32> to vector<1x32xf32>
    %6 = vector.broadcast %4 : vector<16x1xf32> to vector<16x32xf32>
    %7 = vector.broadcast %5 : vector<1x32xf32> to vector<16x32xf32>
    %8 = arith.mulf %6, %7 : vector<16x32xf32>
    %9 = vector.extract_strided_slice %0 {offsets = [0, 1], sizes = [16, 1], strides = [1, 1]} : vector<16x2xf32> to vector<16x1xf32>
    %10 = vector.extract_strided_slice %2 {offsets = [1, 0], sizes = [1, 32], strides = [1, 1]} : vector<2x32xf32> to vector<1x32xf32>
    %11 = vector.broadcast %9 : vector<16x1xf32> to vector<16x32xf32>
    %12 = vector.broadcast %10 : vector<1x32xf32> to vector<16x32xf32>
    %13 = arith.mulf %11, %12 : vector<16x32xf32>
    %14 = arith.addf %8, %13 : vector<16x32xf32>
    %c0_7 = arith.constant 0 : index
    %c0_8 = arith.constant 0 : index
    %15 = vector.load %arg4[%c0_7, %c0_8] : memref<1x32xf32, #tpu.memory_space<vmem>>, vector<1x32xf32>
    %16 = vector.broadcast %15 : vector<1x32xf32> to vector<16x32xf32>
    %17 = arith.addf %14, %16 : vector<16x32xf32>
    %cst = arith.constant 0.000000e+00 : f32
    %18 = vector.broadcast %cst : f32 to vector<16x32xf32>
    %19 = arith.maximumf %17, %18 : vector<16x32xf32>
    %20 = vector.extract_strided_slice %0 {offsets = [0, 0], sizes = [16, 1], strides = [1, 1]} : vector<16x2xf32> to vector<16x1xf32>
    %21 = vector.extract_strided_slice %3 {offsets = [0, 0], sizes = [1, 16], strides = [1, 1]} : vector<2x16xf32> to vector<1x16xf32>
    %22 = vector.broadcast %20 : vector<16x1xf32> to vector<16x16xf32>
    %23 = vector.broadcast %21 : vector<1x16xf32> to vector<16x16xf32>
    %24 = arith.mulf %22, %23 : vector<16x16xf32>
    %25 = vector.extract_strided_slice %0 {offsets = [0, 1], sizes = [16, 1], strides = [1, 1]} : vector<16x2xf32> to vector<16x1xf32>
    %26 = vector.extract_strided_slice %3 {offsets = [1, 0], sizes = [1, 16], strides = [1, 1]} : vector<2x16xf32> to vector<1x16xf32>
    %27 = vector.broadcast %25 : vector<16x1xf32> to vector<16x16xf32>
    %28 = vector.broadcast %26 : vector<1x16xf32> to vector<16x16xf32>
    %29 = arith.mulf %27, %28 : vector<16x16xf32>
    %30 = arith.addf %24, %29 : vector<16x16xf32>
    %c0_9 = arith.constant 0 : index
    %c0_10 = arith.constant 0 : index
    %31 = vector.load %arg6[%c0_9, %c0_10] : memref<1x16xf32, #tpu.memory_space<vmem>>, vector<1x16xf32>
    %32 = vector.broadcast %31 : vector<1x16xf32> to vector<16x16xf32>
    %33 = arith.addf %30, %32 : vector<16x16xf32>
    %cst_11 = arith.constant 0.000000e+00 : f32
    %34 = vector.broadcast %cst_11 : f32 to vector<16x16xf32>
    %35 = arith.maximumf %33, %34 : vector<16x16xf32>
    %c0_12 = arith.constant 0 : index
    %c0_13 = arith.constant 0 : index
    %36 = vector.load %arg7[%c0_12, %c0_13] : memref<1x16xf32, #tpu.memory_space<vmem>>, vector<1x16xf32>
    %37 = vector.broadcast %1 : vector<16x1xf32> to vector<16x16xf32>
    %38 = vector.broadcast %36 : vector<1x16xf32> to vector<16x16xf32>
    %39 = arith.mulf %37, %38 : vector<16x16xf32>
    %c0_14 = arith.constant 0 : index
    %c0_15 = arith.constant 0 : index
    %40 = vector.load %arg8[%c0_14, %c0_15] : memref<1x16xf32, #tpu.memory_space<vmem>>, vector<1x16xf32>
    %41 = vector.broadcast %40 : vector<1x16xf32> to vector<16x16xf32>
    %42 = arith.addf %39, %41 : vector<16x16xf32>
    %cst_16 = arith.constant 0.000000e+00 : f32
    %43 = vector.broadcast %cst_16 : f32 to vector<16x16xf32>
    %44 = arith.maximumf %42, %43 : vector<16x16xf32>
    %c16_i32 = arith.constant 16 : i32
    %45 = arith.muli %arg0, %c16_i32 : i32
    %46 = tpu.iota {dimensions = array<i32: 0>} : vector<16x1xi32>
    %47 = vector.broadcast %45 : i32 to vector<16x1xi32>
    %48 = arith.addi %47, %46 : vector<16x1xi32>
    %c8_i32 = arith.constant 8 : i32
    %c0_i32 = arith.constant 0 : i32
    %49 = arith.cmpi eq, %c8_i32, %c0_i32 : i32
    %c1_i32 = arith.constant 1 : i32
    %50 = arith.select %49, %c1_i32, %c8_i32 : i32
    %51 = vector.broadcast %50 : i32 to vector<16x1xi32>
    %52 = arith.remsi %48, %51 : vector<16x1xi32>
    %c0_i32_17 = arith.constant 0 : i32
    %53 = vector.broadcast %c0_i32_17 : i32 to vector<16x1xi32>
    %54 = arith.cmpi ne, %52, %53 : vector<16x1xi32>
    %c0_i32_18 = arith.constant 0 : i32
    %55 = vector.broadcast %c0_i32_18 : i32 to vector<16x1xi32>
    %56 = arith.cmpi slt, %52, %55 : vector<16x1xi32>
    %c0_i32_19 = arith.constant 0 : i32
    %57 = arith.cmpi slt, %50, %c0_i32_19 : i32
    %58 = vector.broadcast %57 : i1 to vector<16x1xi1>
    %59 = vector.broadcast %58 : vector<16x1xi1> to vector<16x1xi1>
    %60 = arith.xori %56, %59 : vector<16x1xi1>
    %61 = arith.andi %60, %54 : vector<16x1xi1>
    %62 = vector.broadcast %50 : i32 to vector<16x1xi32>
    %63 = arith.addi %52, %62 : vector<16x1xi32>
    %64 = arith.select %61, %63, %52 : vector<16x1xi1>, vector<16x1xi32>
    %c0_i32_20 = arith.constant 0 : i32
    %65 = vector.broadcast %c0_i32_20 : i32 to vector<16x1xi32>
    %66 = arith.cmpi eq, %64, %65 : vector<16x1xi32>
    %67 = vector.extract_strided_slice %19 {offsets = [0, 0], sizes = [16, 16], strides = [1, 1]} : vector<16x32xf32> to vector<16x16xf32>
    %68 = vector.shape_cast %66 : vector<16x1xi1> to vector<16x1xi1>
    %69 = vector.broadcast %68 : vector<16x1xi1> to vector<16x16xi1>
    %70 = arith.select %69, %67, %35 : vector<16x16xi1>, vector<16x16xf32>
    %71 = vector.extract_strided_slice %19 {offsets = [0, 16], sizes = [16, 16], strides = [1, 1]} : vector<16x32xf32> to vector<16x16xf32>
    %72 = vector.shape_cast %66 : vector<16x1xi1> to vector<16x1xi1>
    %73 = vector.broadcast %72 : vector<16x1xi1> to vector<16x16xi1>
    %74 = arith.select %73, %71, %44 : vector<16x16xi1>, vector<16x16xf32>
    %75 = arith.truncf %70 : vector<16x16xf32> to vector<16x16xbf16>
    %c0_21 = arith.constant 0 : index
    %c0_22 = arith.constant 0 : index
    %76 = vector.load %arg9[%c0_21, %c0_22] : memref<16x32xbf16, #tpu.memory_space<vmem>>, vector<16x32xbf16>
    %cst_23 = arith.constant dense<0.000000e+00> : vector<16x32xf32>
    %77 = tpu.matmul %75, %76, %cst_23 {dimension_numbers = #tpu.dot_dimension_numbers<[1], [0], [0], [1], [0, 0, 1, 1], [], []>} : vector<16x16xbf16>, vector<16x32xbf16>, vector<16x32xf32> -> vector<16x32xf32>
    %78 = arith.truncf %74 : vector<16x16xf32> to vector<16x16xbf16>
    %c0_24 = arith.constant 0 : index
    %c0_25 = arith.constant 0 : index
    %79 = vector.load %arg10[%c0_24, %c0_25] : memref<16x32xbf16, #tpu.memory_space<vmem>>, vector<16x32xbf16>
    %cst_26 = arith.constant dense<0.000000e+00> : vector<16x32xf32>
    %80 = tpu.matmul %78, %79, %cst_26 {dimension_numbers = #tpu.dot_dimension_numbers<[1], [0], [0], [1], [0, 0, 1, 1], [], []>} : vector<16x16xbf16>, vector<16x32xbf16>, vector<16x32xf32> -> vector<16x32xf32>
    %81 = arith.addf %77, %80 : vector<16x32xf32>
    %82 = arith.truncf %81 : vector<16x32xf32> to vector<16x32xbf16>
    %c0_27 = arith.constant 0 : index
    %c0_28 = arith.constant 0 : index
    %83 = vector.load %arg11[%c0_27, %c0_28] : memref<16x32xbf16, #tpu.memory_space<vmem>>, vector<16x32xbf16>
    tpu.vector_store %arg11[%c0_27, %c0_28], %82 {strides = array<i32>} : memref<16x32xbf16, #tpu.memory_space<vmem>>, vector<16x32xbf16>,
    return
  }
  func.func @transform_0(%arg0: i32) -> (i32, i32) {
    %c0_i32 = arith.constant 0 : i32
    %c0_i32_0 = arith.constant 0 : i32
    return %arg0, %c0_i32 : i32, i32
  }
  func.func @transform_1(%arg0: i32) -> (i32, i32) {
    %c0_i32 = arith.constant 0 : i32
    %c0_i32_0 = arith.constant 0 : i32
    return %arg0, %c0_i32 : i32, i32
  }
  func.func @transform_2(%arg0: i32) -> (i32, i32) {
    %c0_i32 = arith.constant 0 : i32
    %c0_i32_0 = arith.constant 0 : i32
    %c0_i32_1 = arith.constant 0 : i32
    return %c0_i32, %c0_i32_0 : i32, i32
  }
  func.func @transform_3(%arg0: i32) -> (i32, i32) {
    %c0_i32 = arith.constant 0 : i32
    %c0_i32_0 = arith.constant 0 : i32
    %c0_i32_1 = arith.constant 0 : i32
    return %c0_i32, %c0_i32_0 : i32, i32
  }
  func.func @transform_4(%arg0: i32) -> (i32, i32) {
    %c0_i32 = arith.constant 0 : i32
    %c0_i32_0 = arith.constant 0 : i32
    %c0_i32_1 = arith.constant 0 : i32
    return %c0_i32, %c0_i32_0 : i32, i32
  }
  func.func @transform_5(%arg0: i32) -> (i32, i32) {
    %c0_i32 = arith.constant 0 : i32
    %c0_i32_0 = arith.constant 0 : i32
    %c0_i32_1 = arith.constant 0 : i32
    return %c0_i32, %c0_i32_0 : i32, i32
  }
  func.func @transform_6(%arg0: i32) -> (i32, i32) {
    %c0_i32 = arith.constant 0 : i32
    %c0_i32_0 = arith.constant 0 : i32
    %c0_i32_1 = arith.constant 0 : i32
    return %c0_i32, %c0_i32_0 : i32, i32
  }
  func.func @transform_7(%arg0: i32) -> (i32, i32) {
    %c0_i32 = arith.constant 0 : i32
    %c0_i32_0 = arith.constant 0 : i32
    %c0_i32_1 = arith.constant 0 : i32
    return %c0_i32, %c0_i32_0 : i32, i32
  }
  func.func @transform_8(%arg0: i32) -> (i32, i32) {
    %c0_i32 = arith.constant 0 : i32
    %c0_i32_0 = arith.constant 0 : i32
    %c0_i32_1 = arith.constant 0 : i32
    return %c0_i32, %c0_i32_0 : i32, i32
  }
  func.func @transform_9(%arg0: i32) -> (i32, i32) {
    %c0_i32 = arith.constant 0 : i32
    %c0_i32_0 = arith.constant 0 : i32
    %c0_i32_1 = arith.constant 0 : i32
    return %c0_i32, %c0_i32_0 : i32, i32
  }
  func.func @transform_10(%arg0: i32) -> (i32, i32) {
    %c0_i32 = arith.constant 0 : i32
    %c0_i32_0 = arith.constant 0 : i32
    return %arg0, %c0_i32 : i32, i32
  }
}

</mosaic_0001>

<bundles_post_ra>
// kernel: tpu_custom_call.1
= control target key start
LH: loop header
LB: loop body
LE: loop exit
PB: predicated region body
PF: predicated region fallthrough
CT: control target
= control target key end

     0   :  { %v402_v2 = vmov 0   ;;  %s516_s0 = inlined_call_operand.vmem [shape: f32[16,2], index: 0, kind: input, shape index: {}]   ;;  %s517_s1 = inlined_call_operand.vmem [shape: f32[16,1], index: 1, kind: input, shape index: {}]   ;;  %s518_s2 = inlined_call_operand.vmem [shape: f32[2,32], index: 2, kind: input, shape index: {}]   ;;  %s519_s3 = inlined_call_operand.vmem [shape: f32[1,32], index: 3, kind: input, shape index: {}]   ;;  %s520_s4 = inlined_call_operand.vmem [shape: f32[2,16], index: 4, kind: input, shape index: {}]   ;;  %s521_s5 = inlined_call_operand.vmem [shape: f32[1,16], index: 5, kind: input, shape index: {}]   ;;  %s522_s6 = inlined_call_operand.vmem [shape: f32[1,16], index: 6, kind: input, shape index: {}]   ;;  %s523_s7 = inlined_call_operand.vmem [shape: f32[1,16], index: 7, kind: input, shape index: {}]   ;;  %s524_s8 = inlined_call_operand.vmem [shape: bf16[16,32], index: 8, kind: input, shape index: {}]   ;;  %s525_s9 = inlined_call_operand.vmem [shape: bf16[16,32], index: 9, kind: input, shape index: {}]   ;;  %s526_s10 = inlined_call_operand.hbm [shape: bf16[16,32], index: 10, kind: output, shape index: {}]  }
   0x1   :  { %v39_v0 = vld [vmem:[%s517_s1] sm:$0xff]  ;;  %366 = vset.pattern.permute.xlu0 %v402_v2  ;;  %v40_v3 = vld [vmem:[%s517_s1 + $0x8] sm:$0xff]  ;;  %367 = vset.pattern.permute.xlu1 %v402_v2 }
   0x2   :  { %v37_v1 = vld [vmem:[%s516_s0] sm:$0xff]  ;;  %114 = vperm.xlu0 %366, %v39_v0   ;;  %v38_v4 = vld [vmem:[%s516_s0 + $0x8] sm:$0xff] }
   0x3   :  { %45 = vperm.xlu1 %367, %v37_v1  }
   0x4   :  { %15 = vsyncpa [#allocation3], 0  ;;  %v403_v5 = vmov 1   ;;  %v376_v6 = vld [vmem:[%s524_s8] sm:$0xff]   ;;  %v404_v7 = vmov 0.0   ;;  %vm405_vm0 = vmmov 0   ;;  %v53_v8 = vlaneseq }
   0x5   :  { %349 = vmatprep.subr.bf16.mxu0 %v404_v7  ;;  %351 = vmatprep.mubr.msk.bf16.mxu0 %vm405_vm0, %v404_v7  ;;  %v329_v10 = vld [vmem:[%s522_s6] ss:$0 sm:$0xff]  ;;  %s406_s29 = smov 16   ;;  %vm205_vm3 = vcmask 130048   ;;  %vm308_vm4 = vcmask 257024  }
   0x6   :  { %119 = vperm.xlu0 %366, %v40_v3   ;;  %350 = vmatpush3.bf16.msra.mxu0 %v376_v6  ;;  %v54_v9 = vshrl.u32 %v53_v8, 7  ;;  %v41_v15 = vld [vmem:[%s518_s2] sm:$0x3] }
   0x7   :  { %50 = vperm.xlu1 %367, %v38_v4   ;;  %343 = vmatprep.subr.bf16.mxu1 %v404_v7  ;;  %v42_v16 = vld [vmem:[%s520_s4] sm:$0x3] }
   0x8   :  { %345 = vmatprep.mubr.msk.bf16.mxu1 %vm405_vm0, %v404_v7  ;;  %v55_v12 = vsub.s32 0, %v54_v9  ;;  %v330_v17 = vld [vmem:[%s523_s7] ss:$0 sm:$0xff]  ;;  %v69_v18 = vsub.s32 1, %v54_v9  ;;  %v144_v29 = vadd.s32 8, %v54_v9  ;;  %v152_v45 = vand.u32 7, %v54_v9 }
   0x9   :  { %v377_v25 = vld [vmem:[%s525_s9] sm:$0xff]  }
   0xa   :  { %368 = vset.pattern.permute.xlu0 %v403_v5  ;;  %v56_v20 = vrot.slane %v41_v15, %v55_v12  ;;  %v89_v21 = vrot.slane %v42_v16, %v55_v12  ;;  %v70_v26 = vrot.slane %v41_v15, %v69_v18  ;;  %v95_v27 = vrot.slane %v42_v16, %v69_v18  ;;  %v327_v43 = vld [vmem:[%s519_s3] ss:$0 sm:$0xff]  ;;  %s407_s3 = smov 112  }
   0xb   :  { %369 = vset.pattern.permute.xlu1 %v403_v5  ;;  %60 = vperm.xlu0 %368, %v37_v1   ;;  %v328_v44 = vld [vmem:[%s521_s5] ss:$0 sm:$0xff]  ;;  %v159_v46 = vand.u32 7, %v144_v29  ;;  %vm172_vm1 = vcmp.eq.s32.totalorder %v152_v45, 0  ;;  %s408_s5 = smov [#allocation2]  }
   0xc   :  { %64 = vperm.xlu1 %369, %v38_v4   ;;  %344 = vmatpush3.bf16.msra.mxu1 %v377_v25  ;;  %s316_s30 = sshll.u32 %s408_s5, 4  ;;  %s317_s30 = int_to_ptr.vmem [resolvable:$true] %s316_s30 }
   0xd   :  { %vm173_vm2 = vcmp.eq.s32.totalorder %v159_v46, 0  ;;  %s378_s11 = scalar_lea.vmem %s317_s30, 128  ;;  %p383_p1 = scmp.lt.s32.totalorder %s317_s30, %s317_s30 }
   0xe   :  { %p379_p0 = scmp.ne.s32.totalorder %s317_s30, %s378_s11  ;;  %p384_p2 = scmp.lt.s32.totalorder %s378_s11, %s378_s11 }
   0xf   :  { %375 = vset.pattern.permute.xlu0 %v402_v2 }
  0x10   :  { %p385_p3 = por %p384_p2, %p383_p1 }
  0x12   :  { %p386_p4 = pnand %p385_p3, %p379_p0 }
  0x81   :  { %v115_v11 = vpop.permute.xlu0 %114 }
  0x82   :  { %v46_v13 = vpop.permute.xlu1 %45  ;;  %v128_v14 = vmul.f32 %v329_v10, %v115_v11 }
  0x83   :  { %v57_v30 = vmul.f32 %v56_v20, %v46_v13  ;;  %v90_v31 = vmul.f32 %v89_v21, %v46_v13 }
  0x84   :  { %v137_v23 = vadd.f32 %v330_v17, %v128_v14 }
  0x85   :  { %v120_v19 = vpop.permute.xlu0 %119 }
  0x86   :  { %v51_v22 = vpop.permute.xlu1 %50  ;;  %v129_v24 = vmul.f32 %v329_v10, %v120_v19  ;;  %v139_v34 = vmax.f32 %v137_v23, 0.0 }
  0x87   :  { %v58_v32 = vmul.f32 %v56_v20, %v51_v22  ;;  %v91_v33 = vmul.f32 %v89_v21, %v51_v22 }
  0x88   :  { %v138_v28 = vadd.f32 %v330_v17, %v129_v24 }
  0x8a   :  { %v140_v35 = vmax.f32 %v138_v28, 0.0  ;;  %v61_v36 = vpop.permute.xlu0 %60 }
  0x8b   :  { %v65_v37 = vpop.permute.xlu1 %64  ;;  %v71_v38 = vmul.f32 %v70_v26, %v61_v36  ;;  %v96_v39 = vmul.f32 %v95_v27, %v61_v36 }
  0x8c   :  { %v72_v40 = vmul.f32 %v70_v26, %v65_v37  ;;  %v97_v41 = vmul.f32 %v95_v27, %v65_v37  ;;  %v370_v42 = vpack.i.bf16 %v140_v35, %v139_v34 }
  0x8d   :  { %v73_v47 = vadd.f32 %v71_v38, %v57_v30  ;;  %v98_v48 = vadd.f32 %v96_v39, %v90_v31 }
  0x8e   :  { %v74_v49 = vadd.f32 %v72_v40, %v58_v32  ;;  %v99_v50 = vadd.f32 %v97_v41, %v91_v33  ;;  %371 = vrot.lane.b32.xlu1 %v370_v42, %s406_s29 }
  0x8f   :  { %v82_v51 = vadd.f32 %v327_v43, %v73_v47  ;;  %v107_v52 = vadd.f32 %v328_v44, %v98_v48 }
  0x90   :  { %v83_v53 = vadd.f32 %v327_v43, %v74_v49  ;;  %v108_v54 = vadd.f32 %v328_v44, %v99_v50 }
  0x91   :  { %v84_v55 = vmax.f32 %v82_v51, 0.0  ;;  %v109_v56 = vmax.f32 %v107_v52, 0.0 }
  0x92   :  { %v85_v57 = vmax.f32 %v83_v53, 0.0  ;;  %v110_v58 = vmax.f32 %v108_v54, 0.0 }
  0x93   :  { %v178_v59 = vsel %vm172_vm1, %v84_v55, %v109_v56 }
  0x94   :  { %v179_v60 = vsel %vm173_vm2, %v85_v57, %v110_v58 }
  0x95   :  { %v190_v61 = vpack.c.bf16 %v179_v60, %v178_v59 }
  0x97   :  { %352 = vmatmul.mubr.msk.bf16.vlgmr.msra.gmra.mrb[0].mxu0 %vm205_vm3, %v190_v61 }
 0x100   :  { %v372_v62 = vpop.permute.xlu1 %371 }
 0x101   :  { %v374_v63 = vunpack.i.h.bf16 %v372_v62  ;;  %v373_v0 = vunpack.i.l.bf16 %v372_v62 }
 0x103   :  { %v188_v1 = vsel %vm172_vm1, %v84_v55, %v373_v0  ;;  %v189_v2 = vsel %vm173_vm2, %v85_v57, %v374_v63 }
 0x104   :  { %v193_v3 = vpack.c.bf16 %v189_v2, %v188_v1 }
 0x106   :  { %197 = vrot.lane.b32.xlu0 %v193_v3, %s407_s3 }
 0x16a   :  { %v293_v4 = vpop.f32.mrb[0].mxu0 }
 0x16b   :  { %v353_v5 = vpop.f32.mrb[1].mxu0 }
 0x16c   :  { %v296_v6 = vpop.f32.mrb[2].mxu0 }
 0x16d   :  { %v354_v7 = vpop.f32.mrb[3].mxu0 }
 0x178   :  { %v198_v8 = vpop.permute.xlu0 %197 }
 0x179   :  { %346 = vmatmul.mubr.msk.bf16.vlgmr.msra.gmra.mrb[0].mxu1 %vm205_vm3, %v198_v8 }
 0x24c   :  { %v243_v9 = vpop.f32.mrb[0].mxu1 }
 0x24d   :  { %v294_v10 = vadd.f32 %v293_v4, %v243_v9  ;;  %v347_v11 = vpop.f32.mrb[1].mxu1 }
 0x24e   :  { %v246_v12 = vpop.f32.mrb[2].mxu1 }
 0x24f   :  { %v337_v13 = vpack.c.bf16 %v294_v10, %v294_v10  ;;  %v297_v14 = vadd.f32 %v296_v6, %v246_v12  ;;  %v348_v15 = vpop.f32.mrb[3].mxu1 }
 0x251   :  { %309 = vst.msk [vmem:[#allocation2] sm:$0xf] %vm308_vm4, %v337_v13  ;;  %v338_v16 = vpack.c.bf16 %v297_v14, %v297_v14 }
 0x253   :  { %310 = vst.msk [vmem:[#allocation2 + $0x4] sm:$0xf] %vm308_vm4, %v338_v16 }
 0x254   :  { %389 = shalt.err (!%p386_p4)
}
 0x255   :  { %s390_s14 = scalar_lea.hbm %s526_s10, 128 }
 0x256   :  { %p391_p5 = scmp.ne.s32.totalorder %s526_s10, %s390_s14  ;;  %p394_p6 = scmp.lt.u32.totalorder %s390_s14, %s526_s10 }
 0x258   :  { %p396_p7 = pnand %p394_p6, %p391_p5 }
 0x25a   :  { %399 = shalt.err (!%p396_p7)
}
 0x25b   :  { %s409_s19 = smov 64   ;;  %s410_s20 = smov 4  }
 0x25c   :  { %322 = dma.vmem_to_hbm [thread:$0]  %s317_s30, 128, %s526_s10, [#allocation3], %s409_s19, %s409_s19, %s410_s20  }
 0x25d   :  { %400 = dma.done.wait [#allocation3], 128  }
 0x25e   :  { %401 = vsyncadd [#allocation3], 4294967168 }
 0x25f   :  { %326 = vsyncpa [#allocation3], 1 }

</bundles_post_ra>
